<compile_context>
chip_gen: v7x
topology: tpu7x:2x2x1
jax: 0.10.0
libtpu: 0.0.40
codegen_flags: <defaults>
</compile_context>

<pallas_src>
import math
import functools

import jax
import jax.numpy as jnp
from jax import lax
from jax.experimental import pallas as pl
from jax.experimental.pallas import tpu as pltpu

LANE = 128            # lanes per vreg row
SUB = 8               # sublanes per compute chunk (one f32 vreg)
MAX_BLOCK_ROWS = 512  # sublane rows per grid step (=> 65536 boxes / step)


def _round_up(x, m):
    return ((x + m - 1) // m) * m


def _inner_siou_kernel(pred_ref, tgt_ref, *rest, eps, ratio, neg_gamma, n,
                       block_rows, has_weight, reduce_in_kernel, needs_mask):
    if has_weight:
        w_ref, out_ref = rest
    else:
        (out_ref,) = rest
        w_ref = None

    base_row = pl.program_id(0) * block_rows     # global sublane-row offset
    n_chunks = block_rows // SUB

    if needs_mask:
        # hoisted once per grid step; per chunk the mask is one compare+select
        # against a scalar limit.
        idx0 = (lax.broadcasted_iota(jnp.int32, (SUB, LANE), 0) * LANE
                + lax.broadcasted_iota(jnp.int32, (SUB, LANE), 1))
    else:
        idx0 = None

    def chunk_loss(off):
        rs = pl.ds(off, SUB)
        # single-vreg loads per coordinate plane
        b1_x1 = pred_ref[0, rs, :]
        b1_y1 = pred_ref[1, rs, :]
        b1_x2 = pred_ref[2, rs, :]
        b1_y2 = pred_ref[3, rs, :]
        b2_x1 = tgt_ref[0, rs, :]
        b2_y1 = tgt_ref[1, rs, :]
        b2_x2 = tgt_ref[2, rs, :]
        b2_y2 = tgt_ref[3, rs, :]

        w1 = b1_x2 - b1_x1 + eps
        h1 = b1_y2 - b1_y1 + eps
        w2 = b2_x2 - b2_x1 + eps
        h2 = b2_y2 - b2_y1 + eps

        if ratio == 1.0:
            # inner boxes coincide with the original boxes (default path).
            ib1_x1, ib1_x2, ib1_y1, ib1_y2 = b1_x1, b1_x2, b1_y1, b1_y2
            ib2_x1, ib2_x2, ib2_y1, ib2_y2 = b2_x1, b2_x2, b2_y1, b2_y2
            union_wo_inter = w1 * h1 + w2 * h2
        else:
            half = (1.0 - ratio) * 0.5
            ib1_x1 = b1_x1 + w1 * half
            ib1_x2 = b1_x2 - w1 * half
            ib1_y1 = b1_y1 + h1 * half
            ib1_y2 = b1_y2 - h1 * half
            ib2_x1 = b2_x1 + w2 * half
            ib2_x2 = b2_x2 - w2 * half
            ib2_y1 = b2_y1 + h2 * half
            ib2_y2 = b2_y2 - h2 * half
            union_wo_inter = ((w1 * ratio) * (h1 * ratio)
                              + (w2 * ratio) * (h2 * ratio))

        inner_inter = (
            jnp.maximum(jnp.minimum(ib1_x2, ib2_x2)
                        - jnp.maximum(ib1_x1, ib2_x1), 0.0)
            * jnp.maximum(jnp.minimum(ib1_y2, ib2_y2)
                          - jnp.maximum(ib1_y1, ib2_y1), 0.0))
        inner_union = union_wo_inter - inner_inter + eps
        inner_ious = inner_inter * pl.reciprocal(inner_union, approx=True)

        # enclosing box
        cw = jnp.maximum(jnp.maximum(b1_x2, b2_x2)
                         - jnp.minimum(b1_x1, b2_x1), eps)
        ch = jnp.maximum(jnp.maximum(b1_y2, b2_y2)
                         - jnp.minimum(b1_y1, b2_y1), eps)

        # (sic) "- b1_x1 + b1_x2" exactly reproduces the mmdet reference.
        s_cw = (b2_x1 + b2_x2 - b1_x1 + b1_x2) * 0.5 + eps
        s_ch = (b2_y1 + b2_y2 - b1_y1 + b1_y2) * 0.5 + eps

        # angle_cost = cos(2*asin(sin_alpha) - pi/2) = 2*sa*sqrt(1-sa^2)
        #            = 2*|s_cw|*|s_ch| / (s_cw^2 + s_ch^2)
        # (sa1^2 + sa2^2 == 1, so the result is independent of which of
        #  sa1/sa2 the threshold select picks).
        sq = s_cw * s_cw + s_ch * s_ch
        r_sq = pl.reciprocal(sq, approx=True)
        r_sq = r_sq * (2.0 - sq * r_sq)          # 1 NR step: feeds exp() below
        angle_cost = 2.0 * jnp.abs(s_cw) * jnp.abs(s_ch) * r_sq

        r_cw = pl.reciprocal(cw, approx=True)
        r_cw = r_cw * (2.0 - cw * r_cw)          # 1 NR step: feeds exp() below
        r_ch = pl.reciprocal(ch, approx=True)
        r_ch = r_ch * (2.0 - ch * r_ch)
        rho_x = s_cw * r_cw
        rho_x = rho_x * rho_x
        rho_y = s_ch * r_ch
        rho_y = rho_y * rho_y
        gamma = (angle_cost - 2.0) if neg_gamma else (2.0 - angle_cost)
        distance_cost = 2.0 - jnp.exp(gamma * rho_x) - jnp.exp(gamma * rho_y)

        omiga_w = jnp.abs(w1 - w2) * pl.reciprocal(jnp.maximum(w1, w2),
                                                   approx=True)
        omiga_h = jnp.abs(h1 - h2) * pl.reciprocal(jnp.maximum(h1, h2),
                                                   approx=True)
        ew = 1.0 - jnp.exp(-omiga_w)
        eh = 1.0 - jnp.exp(-omiga_h)
        ew2 = ew * ew
        eh2 = eh * eh
        shape_cost = ew2 * ew2 + eh2 * eh2

        inner_sious = inner_ious - 0.5 * (distance_cost + shape_cost)
        loss = 1.0 - jnp.clip(inner_sious, -1.0, 1.0)

        if has_weight:
            loss = loss * w_ref[rs, :]
        if needs_mask:
            limit = n - (base_row + off) * LANE      # scalar
            loss = jnp.where(idx0 < limit, loss, 0.0)
        return loss

    unroll = max(1, min(4, n_chunks))

    if reduce_in_kernel:
        def body(j, acc):
            off = pl.multiple_of(j * SUB, SUB)
            return acc + chunk_loss(off)

        acc = lax.fori_loop(0, n_chunks, body,
                            jnp.zeros((SUB, LANE), jnp.float32), unroll=unroll)
        out_ref[...] = acc                       # one (8,128) partial-sum block
    else:
        def body(j, carry):
            off = pl.multiple_of(j * SUB, SUB)
            out_ref[pl.ds(off, SUB), :] = chunk_loss(off)
            return carry

        lax.fori_loop(0, n_chunks, body, 0, unroll=unroll)


def inner_siou_loss_pallas(pred, target, weight=None, *, eps=1e-6,
                           neg_gamma=False, ratio=1.0, reduction="mean",
                           avg_factor=None, loss_weight=1.0):
    """Equivalent of InnerSIoULoss.forward (pred/target: (n, 4) xyxy)."""
    assert reduction in ("none", "mean", "sum")
    n = pred.shape[0]

    # TODO(synk): the torch forward's data-dependent early return when `weight`
    # exists but has no positive entries ((pred * weight).sum()) is not
    # reproduced (it would need a host-side value check in JAX).
    if weight is not None and weight.ndim > 1:
        weight = weight.mean(axis=-1)
    has_weight = weight is not None
    reduce_in_kernel = reduction != "none"

    rows = max(1, -(-n // LANE))                     # ceil(n / 128)
    # >= 2 grid steps whenever possible (v7x: 2 TensorCores share the parallel
    # grid axis), capped so one block stays ~2 MiB of box data and the
    # double-buffered working set fits v5e's 16 MiB scoped-VMEM default.
    if rows <= SUB:
        block_rows = SUB
    else:
        block_rows = min(MAX_BLOCK_ROWS, _round_up(-(-rows // 2), SUB))
    num_blocks = -(-rows // block_rows)
    rows_pad = num_blocks * block_rows
    n_pad = rows_pad * LANE

    # Coordinate-major relayout: one transpose(+pad) copy per input (XLA fuses
    # these), then a free reshape to (4, rows_pad, 128).  No concat.
    def to_coord_major(x):
        x = jnp.transpose(x.astype(jnp.float32))               # (4, n)
        if n_pad != n:
            x = jnp.pad(x, ((0, 0), (0, n_pad - n)))
        return x.reshape(4, rows_pad, LANE)

    pred_cm = to_coord_major(pred)
    tgt_cm = to_coord_major(target)

    args = [pred_cm, tgt_cm]
    in_specs = [pl.BlockSpec((4, block_rows, LANE), lambda i: (0, i, 0)),
                pl.BlockSpec((4, block_rows, LANE), lambda i: (0, i, 0))]
    if has_weight:
        w = weight.astype(jnp.float32).reshape(n)
        if n_pad != n:
            w = jnp.pad(w, (0, n_pad - n))
        args.append(w.reshape(rows_pad, LANE))
        in_specs.append(pl.BlockSpec((block_rows, LANE), lambda i: (i, 0)))

    if reduce_in_kernel:
        # one (8,128) lane-dense partial-sum tile per grid step; final tiny
        # sum is done in the wrapper, keeping the grid axis fully parallel.
        out_shape = jax.ShapeDtypeStruct((num_blocks * SUB, LANE), jnp.float32)
        out_spec = pl.BlockSpec((SUB, LANE), lambda i: (i, 0))
    else:
        out_shape = jax.ShapeDtypeStruct((rows_pad, LANE), jnp.float32)
        out_spec = pl.BlockSpec((block_rows, LANE), lambda i: (i, 0))

    # Padded boxes are zero-boxes (finite loss): a zero-padded weight already
    # kills them, and the 'none' path slices them off, so the in-kernel mask is
    # only needed for unweighted mean/sum with padding.
    needs_mask = reduce_in_kernel and (n_pad != n) and (not has_weight)

    kernel = functools.partial(
        _inner_siou_kernel, eps=float(eps), ratio=float(ratio),
        neg_gamma=bool(neg_gamma), n=int(n), block_rows=int(block_rows),
        has_weight=has_weight, reduce_in_kernel=reduce_in_kernel,
        needs_mask=needs_mask)

    out = pl.pallas_call(
        kernel,
        out_shape=out_shape,
        grid_spec=pltpu.PrefetchScalarGridSpec(
            num_scalar_prefetch=0,
            grid=(num_blocks,),
            in_specs=in_specs,
            out_specs=out_spec),
        compiler_params=pltpu.CompilerParams(
            dimension_semantics=("parallel",)),
    )(*args)

    if reduction == "none":
        result = out.reshape(n_pad)[:n]
    elif reduction == "sum":
        result = jnp.sum(out)
    else:  # "mean"
        denom = jnp.float32(n) if avg_factor is None else jnp.float32(avg_factor)
        result = jnp.sum(out) / denom
    return loss_weight * result


def _reference_per_box(pred, target, eps=1e-6, neg_gamma=False, ratio=1.0):
    """Pure-JAX port of the PyTorch inner_siou_loss (per-box, unreduced)."""
    pred = pred.astype(jnp.float32)
    target = target.astype(jnp.float32)
    b1_x1, b1_y1, b1_x2, b1_y2 = pred[:, 0], pred[:, 1], pred[:, 2], pred[:, 3]
    b2_x1, b2_y1, b2_x2, b2_y2 = (target[:, 0], target[:, 1],
                                  target[:, 2], target[:, 3])
    w1 = b1_x2 - b1_x1 + eps
    h1 = b1_y2 - b1_y1 + eps
    w2 = b2_x2 - b2_x1 + eps
    h2 = b2_y2 - b2_y1 + eps
    ib1x1, ib1x2 = b1_x1 + w1 * (1 - ratio) / 2, b1_x2 - w1 * (1 - ratio) / 2
    ib1y1, ib1y2 = b1_y1 + h1 * (1 - ratio) / 2, b1_y2 - h1 * (1 - ratio) / 2
    ib2x1, ib2x2 = b2_x1 + w2 * (1 - ratio) / 2, b2_x2 - w2 * (1 - ratio) / 2
    ib2y1, ib2y2 = b2_y1 + h2 * (1 - ratio) / 2, b2_y2 - h2 * (1 - ratio) / 2
    inter = (jnp.clip(jnp.minimum(ib1x2, ib2x2) - jnp.maximum(ib1x1, ib2x1), 0)
             * jnp.clip(jnp.minimum(ib1y2, ib2y2) - jnp.maximum(ib1y1, ib2y1), 0))
    union = w1 * ratio * h1 * ratio + w2 * ratio * h2 * ratio - inter + eps
    ious = inter / union
    cw = jnp.maximum(jnp.maximum(b1_x2, b2_x2) - jnp.minimum(b1_x1, b2_x1), eps)
    ch = jnp.maximum(jnp.maximum(b1_y2, b2_y2) - jnp.minimum(b1_y1, b2_y1), eps)
    s_cw = (b2_x1 + b2_x2 - b1_x1 + b1_x2) * 0.5 + eps
    s_ch = (b2_y1 + b2_y2 - b1_y1 + b1_y2) * 0.5 + eps
    sigma = jnp.sqrt(s_cw ** 2 + s_ch ** 2)
    sa1 = jnp.abs(s_cw) / sigma
    sa2 = jnp.abs(s_ch) / sigma
    sa = jnp.where(sa1 > math.sqrt(2.0) / 2.0, sa2, sa1)
    angle_cost = jnp.cos(jnp.arcsin(sa) * 2 - math.pi / 2)
    rho_x = (s_cw / cw) ** 2
    rho_y = (s_ch / ch) ** 2
    gamma = angle_cost - 2 if neg_gamma else 2 - angle_cost
    distance_cost = 2 - jnp.exp(gamma * rho_x) - jnp.exp(gamma * rho_y)
    ow = jnp.abs(w1 - w2) / jnp.maximum(w1, w2)
    oh = jnp.abs(h1 - h2) / jnp.maximum(h1, h2)
    shape_cost = (1 - jnp.exp(-ow)) ** 4 + (1 - jnp.exp(-oh)) ** 4
    sious = ious - 0.5 * (distance_cost + shape_cost)
    return 1 - jnp.clip(sious, -1.0, 1.0)


if __name__ == "__main__":
    key = jax.random.PRNGKey(0)
    k1, k2, k3, k4, k5 = jax.random.split(key, 5)

    def make_boxes(ka, kb, n):
        xy = jax.random.uniform(ka, (n, 2), minval=0.0, maxval=10.0)
        wh = jax.random.uniform(kb, (n, 2), minval=0.5, maxval=5.0)
        return jnp.concatenate([xy, xy + wh], axis=-1)          # (n, 4) xyxy

    # Case A: small batch, no weight, mean reduction.
    nA = 8
    predA = make_boxes(k1, k2, nA)
    tgtA = make_boxes(k3, k4, nA)
    outA = jax.block_until_ready(
        inner_siou_loss_pallas(predA, tgtA, reduction="mean"))
    refA = jnp.mean(_reference_per_box(predA, tgtA))
    assert jnp.isfinite(outA), outA
    assert jnp.allclose(outA, refA, rtol=5e-3, atol=5e-3), (outA, refA)

    # Case B/C: bigger batch with per-box weights (multi-block grid, fori_loop
    # chunking, weighted 'none' and 'sum' paths).
    nB = 1500
    kb0, kb1, kb2, kb3, kb4 = jax.random.split(k5, 5)
    predB = make_boxes(kb0, kb1, nB)
    tgtB = make_boxes(kb2, kb3, nB)
    wB = jax.random.uniform(kb4, (nB,), minval=0.0, maxval=2.0)
    ref_per_box = _reference_per_box(predB, tgtB)

    outB = jax.block_until_ready(
        inner_siou_loss_pallas(predB, tgtB, wB, reduction="none"))
    assert outB.shape == (nB,)
    assert jnp.allclose(outB, ref_per_box * wB, rtol=5e-3, atol=5e-3)

    outC = jax.block_until_ready(
        inner_siou_loss_pallas(predB, tgtB, wB, reduction="sum",
                               loss_weight=0.5))
    refC = 0.5 * jnp.sum(ref_per_box * wB)
    assert jnp.allclose(outC, refC, rtol=1e-2, atol=5e-2), (outC, refC)

    # Case D: inner-box ratio != 1 and neg_gamma path, mean reduction.
    outD = jax.block_until_ready(
        inner_siou_loss_pallas(predA, tgtA, ratio=0.75, neg_gamma=True,
                               reduction="mean"))
    refD = jnp.mean(_reference_per_box(predA, tgtA, ratio=0.75,
                                       neg_gamma=True))
    assert jnp.allclose(outD, refD, rtol=5e-3, atol=5e-3), (outD, refD)

    print("KERNEL_OK")
</pallas_src>

<mosaic_0001>
module attributes {stable_mosaic.version = 11 : i64} {
  func.func @_inner_siou_kernel(%arg0: i32, %arg1: memref<4x8x128xf32, #tpu.memory_space<vmem>>, %arg2: memref<4x8x128xf32, #tpu.memory_space<vmem>>, %arg3: memref<8x128xf32, #tpu.memory_space<vmem>>) attributes {dimension_semantics = [#tpu.dimension_semantics<parallel>], iteration_bounds = array<i64: 1>, scalar_prefetch = 0 : i64, scratch_operands = 0 : i64, tpu.core_type = #tpu.core_type<tc>, window_params = [{transform_indices = @transform_0, window_bounds = array<i64: 4, 8, 128>}, {transform_indices = @transform_1, window_bounds = array<i64: 4, 8, 128>}, {transform_indices = @transform_2, window_bounds = array<i64: 8, 128>}]} {
    %c8_i32 = arith.constant 8 : i32
    %0 = arith.muli %arg0, %c8_i32 : i32
    %1 = tpu.iota {dimensions = array<i32: 0>} : vector<8x128xi32>
    %c128_i32 = arith.constant 128 : i32
    %2 = vector.broadcast %c128_i32 : i32 to vector<8x128xi32>
    %3 = arith.muli %1, %2 : vector<8x128xi32>
    %4 = tpu.iota {dimensions = array<i32: 1>} : vector<8x128xi32>
    %5 = arith.addi %3, %4 : vector<8x128xi32>
    %cst = arith.constant 0.000000e+00 : f32
    %6 = vector.broadcast %cst : f32 to vector<8x128xf32>
    %c0_i32 = arith.constant 0 : i32
    %c8_i32_0 = arith.constant 8 : i32
    %7 = arith.muli %c0_i32, %c8_i32_0 : i32
    %8 = tpu.assume_multiple %7, 8 : i32
    %c0 = arith.constant 0 : index
    %9 = arith.index_cast %8 : i32 to index
    %c0_1 = arith.constant 0 : index
    %10 = vector.load %arg1[%c0, %9, %c0_1] : memref<4x8x128xf32, #tpu.memory_space<vmem>>, vector<1x8x128xf32>
    %11 = vector.shape_cast %10 : vector<1x8x128xf32> to vector<8x128xf32>
    %c1 = arith.constant 1 : index
    %12 = arith.index_cast %8 : i32 to index
    %c0_2 = arith.constant 0 : index
    %13 = vector.load %arg1[%c1, %12, %c0_2] : memref<4x8x128xf32, #tpu.memory_space<vmem>>, vector<1x8x128xf32>
    %14 = vector.shape_cast %13 : vector<1x8x128xf32> to vector<8x128xf32>
    %c2 = arith.constant 2 : index
    %15 = arith.index_cast %8 : i32 to index
    %c0_3 = arith.constant 0 : index
    %16 = vector.load %arg1[%c2, %15, %c0_3] : memref<4x8x128xf32, #tpu.memory_space<vmem>>, vector<1x8x128xf32>
    %17 = vector.shape_cast %16 : vector<1x8x128xf32> to vector<8x128xf32>
    %c3 = arith.constant 3 : index
    %18 = arith.index_cast %8 : i32 to index
    %c0_4 = arith.constant 0 : index
    %19 = vector.load %arg1[%c3, %18, %c0_4] : memref<4x8x128xf32, #tpu.memory_space<vmem>>, vector<1x8x128xf32>
    %20 = vector.shape_cast %19 : vector<1x8x128xf32> to vector<8x128xf32>
    %c0_5 = arith.constant 0 : index
    %21 = arith.index_cast %8 : i32 to index
    %c0_6 = arith.constant 0 : index
    %22 = vector.load %arg2[%c0_5, %21, %c0_6] : memref<4x8x128xf32, #tpu.memory_space<vmem>>, vector<1x8x128xf32>
    %23 = vector.shape_cast %22 : vector<1x8x128xf32> to vector<8x128xf32>
    %c1_7 = arith.constant 1 : index
    %24 = arith.index_cast %8 : i32 to index
    %c0_8 = arith.constant 0 : index
    %25 = vector.load %arg2[%c1_7, %24, %c0_8] : memref<4x8x128xf32, #tpu.memory_space<vmem>>, vector<1x8x128xf32>
    %26 = vector.shape_cast %25 : vector<1x8x128xf32> to vector<8x128xf32>
    %c2_9 = arith.constant 2 : index
    %27 = arith.index_cast %8 : i32 to index
    %c0_10 = arith.constant 0 : index
    %28 = vector.load %arg2[%c2_9, %27, %c0_10] : memref<4x8x128xf32, #tpu.memory_space<vmem>>, vector<1x8x128xf32>
    %29 = vector.shape_cast %28 : vector<1x8x128xf32> to vector<8x128xf32>
    %c3_11 = arith.constant 3 : index
    %30 = arith.index_cast %8 : i32 to index
    %c0_12 = arith.constant 0 : index
    %31 = vector.load %arg2[%c3_11, %30, %c0_12] : memref<4x8x128xf32, #tpu.memory_space<vmem>>, vector<1x8x128xf32>
    %32 = vector.shape_cast %31 : vector<1x8x128xf32> to vector<8x128xf32>
    %33 = arith.subf %17, %11 : vector<8x128xf32>
    %cst_13 = arith.constant 9.99999997E-7 : f32
    %34 = vector.broadcast %cst_13 : f32 to vector<8x128xf32>
    %35 = arith.addf %33, %34 : vector<8x128xf32>
    %36 = arith.subf %20, %14 : vector<8x128xf32>
    %cst_14 = arith.constant 9.99999997E-7 : f32
    %37 = vector.broadcast %cst_14 : f32 to vector<8x128xf32>
    %38 = arith.addf %36, %37 : vector<8x128xf32>
    %39 = arith.subf %29, %23 : vector<8x128xf32>
    %cst_15 = arith.constant 9.99999997E-7 : f32
    %40 = vector.broadcast %cst_15 : f32 to vector<8x128xf32>
    %41 = arith.addf %39, %40 : vector<8x128xf32>
    %42 = arith.subf %32, %26 : vector<8x128xf32>
    %cst_16 = arith.constant 9.99999997E-7 : f32
    %43 = vector.broadcast %cst_16 : f32 to vector<8x128xf32>
    %44 = arith.addf %42, %43 : vector<8x128xf32>
    %45 = arith.mulf %35, %38 : vector<8x128xf32>
    %46 = arith.mulf %41, %44 : vector<8x128xf32>
    %47 = arith.addf %45, %46 : vector<8x128xf32>
    %48 = arith.minimumf %17, %29 : vector<8x128xf32>
    %49 = arith.maximumf %11, %23 : vector<8x128xf32>
    %50 = arith.subf %48, %49 : vector<8x128xf32>
    %cst_17 = arith.constant 0.000000e+00 : f32
    %51 = vector.broadcast %cst_17 : f32 to vector<8x128xf32>
    %52 = arith.maximumf %50, %51 : vector<8x128xf32>
    %53 = arith.minimumf %20, %32 : vector<8x128xf32>
    %54 = arith.maximumf %14, %26 : vector<8x128xf32>
    %55 = arith.subf %53, %54 : vector<8x128xf32>
    %cst_18 = arith.constant 0.000000e+00 : f32
    %56 = vector.broadcast %cst_18 : f32 to vector<8x128xf32>
    %57 = arith.maximumf %55, %56 : vector<8x128xf32>
    %58 = arith.mulf %52, %57 : vector<8x128xf32>
    %59 = arith.subf %47, %58 : vector<8x128xf32>
    %cst_19 = arith.constant 9.99999997E-7 : f32
    %60 = vector.broadcast %cst_19 : f32 to vector<8x128xf32>
    %61 = arith.addf %59, %60 : vector<8x128xf32>
    %62 = tpu.reciprocal %61 {approx = true} : vector<8x128xf32> -> vector<8x128xf32>
    %63 = arith.mulf %58, %62 : vector<8x128xf32>
    %64 = arith.maximumf %17, %29 : vector<8x128xf32>
    %65 = arith.minimumf %11, %23 : vector<8x128xf32>
    %66 = arith.subf %64, %65 : vector<8x128xf32>
    %cst_20 = arith.constant 9.99999997E-7 : f32
    %67 = vector.broadcast %cst_20 : f32 to vector<8x128xf32>
    %68 = arith.maximumf %66, %67 : vector<8x128xf32>
    %69 = arith.maximumf %20, %32 : vector<8x128xf32>
    %70 = arith.minimumf %14, %26 : vector<8x128xf32>
    %71 = arith.subf %69, %70 : vector<8x128xf32>
    %cst_21 = arith.constant 9.99999997E-7 : f32
    %72 = vector.broadcast %cst_21 : f32 to vector<8x128xf32>
    %73 = arith.maximumf %71, %72 : vector<8x128xf32>
    %74 = arith.addf %23, %29 : vector<8x128xf32>
    %75 = arith.subf %74, %11 : vector<8x128xf32>
    %76 = arith.addf %75, %17 : vector<8x128xf32>
    %cst_22 = arith.constant 5.000000e-01 : f32
    %77 = vector.broadcast %cst_22 : f32 to vector<8x128xf32>
    %78 = arith.mulf %76, %77 : vector<8x128xf32>
    %cst_23 = arith.constant 9.99999997E-7 : f32
    %79 = vector.broadcast %cst_23 : f32 to vector<8x128xf32>
    %80 = arith.addf %78, %79 : vector<8x128xf32>
    %81 = arith.addf %26, %32 : vector<8x128xf32>
    %82 = arith.subf %81, %14 : vector<8x128xf32>
    %83 = arith.addf %82, %20 : vector<8x128xf32>
    %cst_24 = arith.constant 5.000000e-01 : f32
    %84 = vector.broadcast %cst_24 : f32 to vector<8x128xf32>
    %85 = arith.mulf %83, %84 : vector<8x128xf32>
    %cst_25 = arith.constant 9.99999997E-7 : f32
    %86 = vector.broadcast %cst_25 : f32 to vector<8x128xf32>
    %87 = arith.addf %85, %86 : vector<8x128xf32>
    %88 = arith.mulf %80, %80 : vector<8x128xf32>
    %89 = arith.mulf %87, %87 : vector<8x128xf32>
    %90 = arith.addf %88, %89 : vector<8x128xf32>
    %91 = tpu.reciprocal %90 {approx = true} : vector<8x128xf32> -> vector<8x128xf32>
    %92 = arith.mulf %90, %91 : vector<8x128xf32>
    %cst_26 = arith.constant 2.000000e+00 : f32
    %93 = vector.broadcast %cst_26 : f32 to vector<8x128xf32>
    %94 = arith.subf %93, %92 : vector<8x128xf32>
    %95 = arith.mulf %91, %94 : vector<8x128xf32>
    %96 = math.absf %80 : vector<8x128xf32>
    %cst_27 = arith.constant 2.000000e+00 : f32
    %97 = vector.broadcast %cst_27 : f32 to vector<8x128xf32>
    %98 = arith.mulf %97, %96 : vector<8x128xf32>
    %99 = math.absf %87 : vector<8x128xf32>
    %100 = arith.mulf %98, %99 : vector<8x128xf32>
    %101 = arith.mulf %100, %95 : vector<8x128xf32>
    %102 = tpu.reciprocal %68 {approx = true} : vector<8x128xf32> -> vector<8x128xf32>
    %103 = arith.mulf %68, %102 : vector<8x128xf32>
    %cst_28 = arith.constant 2.000000e+00 : f32
    %104 = vector.broadcast %cst_28 : f32 to vector<8x128xf32>
    %105 = arith.subf %104, %103 : vector<8x128xf32>
    %106 = arith.mulf %102, %105 : vector<8x128xf32>
    %107 = tpu.reciprocal %73 {approx = true} : vector<8x128xf32> -> vector<8x128xf32>
    %108 = arith.mulf %73, %107 : vector<8x128xf32>
    %cst_29 = arith.constant 2.000000e+00 : f32
    %109 = vector.broadcast %cst_29 : f32 to vector<8x128xf32>
    %110 = arith.subf %109, %108 : vector<8x128xf32>
    %111 = arith.mulf %107, %110 : vector<8x128xf32>
    %112 = arith.mulf %80, %106 : vector<8x128xf32>
    %113 = arith.mulf %112, %112 : vector<8x128xf32>
    %114 = arith.mulf %87, %111 : vector<8x128xf32>
    %115 = arith.mulf %114, %114 : vector<8x128xf32>
    %cst_30 = arith.constant 2.000000e+00 : f32
    %116 = vector.broadcast %cst_30 : f32 to vector<8x128xf32>
    %117 = arith.subf %116, %101 : vector<8x128xf32>
    %118 = arith.mulf %117, %113 : vector<8x128xf32>
    %119 = math.exp %118 : vector<8x128xf32>
    %cst_31 = arith.constant 2.000000e+00 : f32
    %120 = vector.broadcast %cst_31 : f32 to vector<8x128xf32>
    %121 = arith.subf %120, %119 : vector<8x128xf32>
    %122 = arith.mulf %117, %115 : vector<8x128xf32>
    %123 = math.exp %122 : vector<8x128xf32>
    %124 = arith.subf %121, %123 : vector<8x128xf32>
    %125 = arith.subf %35, %41 : vector<8x128xf32>
    %126 = math.absf %125 : vector<8x128xf32>
    %127 = arith.maximumf %35, %41 : vector<8x128xf32>
    %128 = tpu.reciprocal %127 {approx = true} : vector<8x128xf32> -> vector<8x128xf32>
    %129 = arith.mulf %126, %128 : vector<8x128xf32>
    %130 = arith.subf %38, %44 : vector<8x128xf32>
    %131 = math.absf %130 : vector<8x128xf32>
    %132 = arith.maximumf %38, %44 : vector<8x128xf32>
    %133 = tpu.reciprocal %132 {approx = true} : vector<8x128xf32> -> vector<8x128xf32>
    %134 = arith.mulf %131, %133 : vector<8x128xf32>
    %cst_32 = arith.constant 0.000000e+00 : f32
    %135 = vector.broadcast %cst_32 : f32 to vector<8x128xf32>
    %136 = arith.subf %135, %129 : vector<8x128xf32>
    %137 = math.exp %136 : vector<8x128xf32>
    %cst_33 = arith.constant 1.000000e+00 : f32
    %138 = vector.broadcast %cst_33 : f32 to vector<8x128xf32>
    %139 = arith.subf %138, %137 : vector<8x128xf32>
    %cst_34 = arith.constant 0.000000e+00 : f32
    %140 = vector.broadcast %cst_34 : f32 to vector<8x128xf32>
    %141 = arith.subf %140, %134 : vector<8x128xf32>
    %142 = math.exp %141 : vector<8x128xf32>
    %cst_35 = arith.constant 1.000000e+00 : f32
    %143 = vector.broadcast %cst_35 : f32 to vector<8x128xf32>
    %144 = arith.subf %143, %142 : vector<8x128xf32>
    %145 = arith.mulf %139, %139 : vector<8x128xf32>
    %146 = arith.mulf %144, %144 : vector<8x128xf32>
    %147 = arith.mulf %145, %145 : vector<8x128xf32>
    %148 = arith.mulf %146, %146 : vector<8x128xf32>
    %149 = arith.addf %147, %148 : vector<8x128xf32>
    %150 = arith.addf %124, %149 : vector<8x128xf32>
    %cst_36 = arith.constant 5.000000e-01 : f32
    %151 = vector.broadcast %cst_36 : f32 to vector<8x128xf32>
    %152 = arith.mulf %151, %150 : vector<8x128xf32>
    %153 = arith.subf %63, %152 : vector<8x128xf32>
    %cst_37 = arith.constant -1.000000e+00 : f32
    %cst_38 = arith.constant 1.000000e+00 : f32
    %154 = vector.broadcast %cst_37 : f32 to vector<8x128xf32>
    %155 = arith.maximumf %154, %153 : vector<8x128xf32>
    %156 = vector.broadcast %cst_38 : f32 to vector<8x128xf32>
    %157 = arith.minimumf %156, %155 : vector<8x128xf32>
    %cst_39 = arith.constant 1.000000e+00 : f32
    %158 = vector.broadcast %cst_39 : f32 to vector<8x128xf32>
    %159 = arith.subf %158, %157 : vector<8x128xf32>
    %160 = arith.addi %0, %8 : i32
    %c128_i32_40 = arith.constant 128 : i32
    %161 = arith.muli %160, %c128_i32_40 : i32
    %c8_i32_41 = arith.constant 8 : i32
    %162 = arith.subi %c8_i32_41, %161 : i32
    %163 = vector.broadcast %162 : i32 to vector<8x128xi32>
    %164 = arith.cmpi slt, %5, %163 : vector<8x128xi32>
    %cst_42 = arith.constant 0.000000e+00 : f32
    %165 = vector.broadcast %cst_42 : f32 to vector<8x128xf32>
    %166 = arith.select %164, %159, %165 : vector<8x128xi1>, vector<8x128xf32>
    %167 = arith.addf %6, %166 : vector<8x128xf32>
    %c1_i32 = arith.constant 1 : i32
    %c0_43 = arith.constant 0 : index
    %c0_44 = arith.constant 0 : index
    %168 = vector.load %arg3[%c0_43, %c0_44] : memref<8x128xf32, #tpu.memory_space<vmem>>, vector<8x128xf32>
    tpu.vector_store %arg3[%c0_43, %c0_44], %167 {strides = array<i32>} : memref<8x128xf32, #tpu.memory_space<vmem>>, vector<8x128xf32>,
    return
  }
  func.func @transform_0(%arg0: i32) -> (i32, i32, i32) {
    %c0_i32 = arith.constant 0 : i32
    %c0_i32_0 = arith.constant 0 : i32
    %c0_i32_1 = arith.constant 0 : i32
    return %c0_i32, %arg0, %c0_i32_0 : i32, i32, i32
  }
  func.func @transform_1(%arg0: i32) -> (i32, i32, i32) {
    %c0_i32 = arith.constant 0 : i32
    %c0_i32_0 = arith.constant 0 : i32
    %c0_i32_1 = arith.constant 0 : i32
    return %c0_i32, %arg0, %c0_i32_0 : i32, i32, i32
  }
  func.func @transform_2(%arg0: i32) -> (i32, i32) {
    %c0_i32 = arith.constant 0 : i32
    %c0_i32_0 = arith.constant 0 : i32
    return %arg0, %c0_i32 : i32, i32
  }
}

</mosaic_0001>

<bundles_post_ra>
// kernel: tpu_custom_call.1
= control target key start
LH: loop header
LB: loop body
LE: loop exit
PB: predicated region body
PF: predicated region fallthrough
CT: control target
= control target key end

     0   :  { %7 = vsyncpa [#allocation3], 0  ;;  %s382_s0 = inlined_call_operand.hbm [shape: f32[4,8,128], index: 0, kind: input, shape index: {}]   ;;  %s383_s1 = inlined_call_operand.hbm [shape: f32[4,8,128], index: 1, kind: input, shape index: {}]   ;;  %s384_s2 = inlined_call_operand.hbm [shape: f32[8,128], index: 2, kind: output, shape index: {}]  }
   0x1   :  { %8 = vsyncpa [#allocation6], 0 }
   0x2   :  { %9 = vsyncpa [#allocation4], 0  ;;  %s296_s9 = smov [#allocation2]   ;;  %s224_s13 = scalar_lea.hbm %s382_s0, 512 }
   0x3   :  { %s15_s10 = sshll.u32 %s296_s9, 4  ;;  %p225_p0 = scmp.ne.s32.totalorder %s382_s0, %s224_s13  ;;  %s16_s10 = int_to_ptr.vmem [resolvable:$true] %s15_s10 }
   0x4   :  { %p228_p1 = scmp.lt.u32.totalorder %s224_s13, %s382_s0 }
   0x6   :  { %p230_p2 = pnand %p228_p1, %p225_p0 }
   0x8   :  { %233 = shalt.err (!%p230_p2)
}
   0x9   :  { %s234_s18 = scalar_lea.vmem %s16_s10, 512  ;;  %p239_p4 = scmp.lt.s32.totalorder %s16_s10, %s16_s10 }
   0xa   :  { %p235_p3 = scmp.ne.s32.totalorder %s16_s10, %s234_s18  ;;  %p240_p5 = scmp.lt.s32.totalorder %s234_s18, %s234_s18 }
   0xc   :  { %p241_p6 = por %p240_p5, %p239_p4 }
   0xe   :  { %p242_p7 = pnand %p241_p6, %p235_p3 }
  0x10   :  { %245 = shalt.err (!%p242_p7)
}
  0x11   :  { %s297_s19 = smov 128   ;;  %s298_s20 = smov 8  }
  0x12   :  { %21 = dma.hbm_to_vmem [thread:$0]  %s382_s0, 512, %s16_s10, [#allocation3], %s297_s19, %s297_s19, %s298_s20  }
  0x13   :  { %s299_s23 = smov [#allocation5]   ;;  %s246_s27 = scalar_lea.hbm %s383_s1, 512 }
  0x14   :  { %s27_s24 = sshll.u32 %s299_s23, 4  ;;  %p247_p8 = scmp.ne.s32.totalorder %s383_s1, %s246_s27  ;;  %s28_s24 = int_to_ptr.vmem [resolvable:$true] %s27_s24 }
  0x15   :  { %p250_p9 = scmp.lt.u32.totalorder %s246_s27, %s383_s1 }
  0x17   :  { %p252_p10 = pnand %p250_p9, %p247_p8 }
  0x19   :  { %255 = shalt.err (!%p252_p10)
}
  0x1a   :  { %s256_s4 = scalar_lea.vmem %s28_s24, 512  ;;  %p261_p12 = scmp.lt.s32.totalorder %s28_s24, %s28_s24 }
  0x1b   :  { %p257_p11 = scmp.ne.s32.totalorder %s28_s24, %s256_s4  ;;  %p262_p13 = scmp.lt.s32.totalorder %s256_s4, %s256_s4 }
  0x1d   :  { %p263_p0 = por %p262_p13, %p261_p12 }
  0x1f   :  { %p264_p1 = pnand %p263_p0, %p257_p11 }
  0x21   :  { %267 = shalt.err (!%p264_p1)
}
  0x22   :  { %33 = dma.hbm_to_vmem [thread:$0]  %s383_s1, 512, %s28_s24, [#allocation6], %s297_s19, %s297_s19, %s298_s20  }
  0x23   :  { %290 = dma.done.wait [#allocation3], 512  }
  0x24   :  { %291 = vsyncadd [#allocation3], 4294966784 }
  0x25   :  { %292 = dma.done.wait [#allocation6], 512  }
  0x26   :  { %293 = vsyncadd [#allocation6], 4294966784  ;;  %v340_v0 = vld [vmem:[#allocation2] sm:$0xff]  ;;  %v342_v1 = vld [vmem:[#allocation2 + $0x10] sm:$0xff]  ;;  %s300_s1 = smov [#allocation7]  }
  0x27   :  { %v344_v2 = vld [vmem:[#allocation2 + $0x8] sm:$0xff]  ;;  %v346_v3 = vld [vmem:[#allocation2 + $0x18] sm:$0xff]  ;;  %v348_v4 = vld [vmem:[#allocation5] sm:$0xff]  ;;  %v64_v5 = vsub.f32 %v342_v1, %v340_v0  ;;  %s182_s6 = sshll.u32 %s300_s1, 4  ;;  %s183_s6 = int_to_ptr.vmem [resolvable:$true] %s182_s6 }
  0x28   :  { %v59_v6 = vld [vmem:[#allocation5 + $0x8] sm:$0xff]  ;;  %v61_v7 = vld [vmem:[#allocation5 + $0x10] sm:$0xff]  ;;  %v63_v8 = vld [vmem:[#allocation5 + $0x18] sm:$0xff]  ;;  %v89_v9 = vmin.f32 %v340_v0, %v348_v4  ;;  %v66_v10 = vsub.f32 %v346_v3, %v344_v2  ;;  %v76_v49 = vmax.f32 %v340_v0, %v348_v4  ;;  %s268_s7 = scalar_lea.vmem %s183_s6, 128  ;;  %p273_p3 = scmp.lt.s32.totalorder %s183_s6, %s183_s6 }
  0x29   :  { %v68_v11 = vsub.f32 %v61_v7, %v348_v4  ;;  %v70_v12 = vsub.f32 %v63_v8, %v59_v6  ;;  %v88_v13 = vmax.f32 %v342_v1, %v61_v7  ;;  %v92_v14 = vmax.f32 %v346_v3, %v63_v8  ;;  %p269_p2 = scmp.ne.s32.totalorder %s183_s6, %s268_s7  ;;  %p274_p4 = scmp.lt.s32.totalorder %s268_s7, %s268_s7 }
  0x2a   :  { %v65_v15 = vadd.f32 1e-06, %v64_v5  ;;  %v93_v17 = vmin.f32 %v344_v2, %v59_v6  ;;  %v96_v19 = vadd.f32 %v61_v7, %v348_v4  ;;  %v67_v20 = vadd.f32 1e-06, %v66_v10 }
  0x2b   :  { %v69_v16 = vadd.f32 1e-06, %v68_v11  ;;  %v90_v18 = vsub.f32 %v88_v13, %v89_v9  ;;  %v71_v21 = vadd.f32 1e-06, %v70_v12  ;;  %v101_v23 = vadd.f32 %v63_v8, %v59_v6  ;;  %p275_p5 = por %p274_p4, %p273_p3 }
  0x2c   :  { %v94_v22 = vsub.f32 %v92_v14, %v93_v17  ;;  %v97_v25 = vsub.f32 %v96_v19, %v340_v0  ;;  %v75_v51 = vmin.f32 %v342_v1, %v61_v7  ;;  %v79_v52 = vmin.f32 %v346_v3, %v63_v8 }
  0x2d   :  { %v91_v24 = vmax.f32 %v90_v18, 1e-06  ;;  %v102_v27 = vsub.f32 %v101_v23, %v344_v2  ;;  %v141_v28 = vmax.f32 %v65_v15, %v69_v16  ;;  %v146_v31 = vmax.f32 %v67_v20, %v71_v21  ;;  %p276_p6 = pnand %p275_p5, %p269_p2 }
  0x2e   :  { %v95_v26 = vmax.f32 %v94_v22, 1e-06  ;;  %v98_v29 = vadd.f32 %v97_v25, %v342_v1  ;;  %v139_v36 = vsub.f32 %v65_v15, %v69_v16  ;;  %v144_v38 = vsub.f32 %v67_v20, %v71_v21 }
  0x2f   :  { %204 = vrcp.f32 %v91_v24  ;;  %v103_v30 = vadd.f32 %v102_v27, %v346_v3  ;;  %v80_v53 = vmax.f32 %v344_v2, %v59_v6  ;;  %v77_v61 = vsub.f32 %v75_v51, %v76_v49 }
  0x30   :  { %206 = vrcp.f32 %v95_v26  ;;  %v99_v32 = vmul.f32 0.5, %v98_v29  ;;  %v140_v41 = vand.u32 2147483647, %v139_v36  ;;  %v145_v43 = vand.u32 2147483647, %v144_v38 }
  0x31   :  { %208 = vrcp.f32 %v141_v28  ;;  %v104_v33 = vmul.f32 0.5, %v103_v30  ;;  %v81_v62 = vsub.f32 %v79_v52, %v80_v53  ;;  %v72_v1 = vmul.f32 %v67_v20, %v65_v15 }
  0x32   :  { %210 = vrcp.f32 %v146_v31  ;;  %v100_v34 = vadd.f32 1e-06, %v99_v32  ;;  %v73_v7 = vmul.f32 %v71_v21, %v69_v16  ;;  %v78_v3 = vmax.f32 %v77_v61, 0.0 }
  0x33   :  { %v105_v35 = vadd.f32 1e-06, %v104_v33  ;;  %v82_v2 = vmax.f32 %v81_v62, 0.0  ;;  %v41_v33 = vlaneseq }
  0x34   :  { %v106_v37 = vmul.f32 %v100_v34, %v100_v34  ;;  %v113_v56 = vand.u32 2147483647, %v100_v34  ;;  %v74_v14 = vadd.f32 %v73_v7, %v72_v1 }
  0x35   :  { %v107_v39 = vmul.f32 %v105_v35, %v105_v35  ;;  %v115_v9 = vand.u32 2147483647, %v105_v35  ;;  %v83_v17 = vmul.f32 %v82_v2, %v78_v3 }
  0x36   :  { %v114_v5 = vmul.f32 2.0, %v113_v56 }
  0x37   :  { %v108_v40 = vadd.f32 %v107_v39, %v106_v37  ;;  %v42_v37 = vshrl.u32 %v41_v33, 7 }
  0x38   :  { %v116_v11 = vmul.f32 %v115_v9, %v114_v5 }
  0x39   :  { %v205_v42 = vpop.eup %204  ;;  %212 = vrcp.f32 %v108_v40 }
  0x3a   :  { %v207_v44 = vpop.eup %206  ;;  %v119_v46 = vmul.f32 %v205_v42, %v91_v24  ;;  %v84_v24 = vsub.f32 %v74_v14, %v83_v17 }
  0x3b   :  { %v209_v45 = vpop.eup %208  ;;  %v123_v47 = vmul.f32 %v207_v44, %v95_v26 }
  0x3c   :  { %v211_v48 = vpop.eup %210  ;;  %v143_v50 = vmul.f32 %v209_v45, %v140_v41  ;;  %v120_v57 = vsub.f32 2.0, %v119_v46  ;;  %v85_v21 = vadd.f32 1e-06, %v84_v24 }
  0x3d   :  { %v148_v54 = vmul.f32 %v211_v48, %v145_v43  ;;  %v124_v58 = vsub.f32 2.0, %v123_v47  ;;  %v43_v43 = vmul.u32 128, %v42_v37 }
  0x3e   :  { %v149_v55 = vsub.f32 0.0, %v143_v50  ;;  %v121_v0 = vmul.f32 %v205_v42, %v120_v57 }
  0x3f   :  { %v153_v59 = vsub.f32 0.0, %v148_v54  ;;  %v125_v4 = vmul.f32 %v207_v44, %v124_v58  ;;  %v45_v44 = vand.u32 127, %v41_v33 }
  0x40   :  { %v150_v60 = vmul.f32 1.442695, %v149_v55  ;;  %v126_v12 = vmul.f32 %v121_v0, %v100_v34 }
  0x41   :  { %v154_v63 = vmul.f32 1.442695, %v153_v59  ;;  %v128_v13 = vmul.f32 %v125_v4, %v105_v35  ;;  %v46_v48 = vadd.s32 %v45_v44, %v43_v43 }
  0x42   :  { %214 = vpow2.f32 %v150_v60  ;;  %v127_v22 = vmul.f32 %v126_v12, %v126_v12 }
  0x43   :  { %v213_v10 = vpop.eup %212  ;;  %216 = vpow2.f32 %v154_v63  ;;  %v129_v23 = vmul.f32 %v128_v13, %v128_v13  ;;  %vm172_vm0 = vcmp.lt.s32.totalorder %v46_v48, 8 }
  0x44   :  { %v110_v6 = vmul.f32 %v213_v10, %v108_v40 }
  0x46   :  { %v111_v8 = vsub.f32 2.0, %v110_v6 }
  0x48   :  { %v112_v18 = vmul.f32 %v213_v10, %v111_v8 }
  0x4a   :  { %v117_v19 = vmul.f32 %v116_v11, %v112_v18 }
  0x4c   :  { %v130_v25 = vsub.f32 2.0, %v117_v19  ;;  %v215_v26 = vpop.eup %214 }
  0x4d   :  { %v217_v15 = vpop.eup %216  ;;  %v152_v29 = vsub.f32 1.0, %v215_v26 }
  0x4e   :  { %v131_v16 = vmul.f32 %v130_v25, %v127_v22  ;;  %v135_v20 = vmul.f32 %v130_v25, %v129_v23  ;;  %v156_v30 = vsub.f32 1.0, %v217_v15 }
  0x4f   :  { %v157_v31 = vmul.f32 %v152_v29, %v152_v29 }
  0x50   :  { %v132_v27 = vmul.f32 1.442695, %v131_v16  ;;  %v136_v28 = vmul.f32 1.442695, %v135_v20  ;;  %v158_v32 = vmul.f32 %v156_v30, %v156_v30 }
  0x51   :  { %v159_v34 = vmul.f32 %v157_v31, %v157_v31 }
  0x52   :  { %218 = vpow2.f32 %v132_v27  ;;  %v160_v35 = vmul.f32 %v158_v32, %v158_v32 }
  0x53   :  { %220 = vpow2.f32 %v136_v28 }
  0x54   :  { %222 = vrcp.f32 %v85_v21  ;;  %v161_v40 = vadd.f32 %v160_v35, %v159_v34 }
  0x5c   :  { %v219_v36 = vpop.eup %218 }
  0x5d   :  { %v221_v38 = vpop.eup %220  ;;  %v134_v39 = vsub.f32 2.0, %v219_v36 }
  0x5e   :  { %v223_v41 = vpop.eup %222 }
  0x5f   :  { %v138_v42 = vsub.f32 %v134_v39, %v221_v38  ;;  %v87_v45 = vmul.f32 %v223_v41, %v83_v17 }
  0x61   :  { %v162_v46 = vadd.f32 %v161_v40, %v138_v42 }
  0x63   :  { %v163_v47 = vmul.f32 0.5, %v162_v46 }
  0x65   :  { %v164_v49 = vsub.f32 %v87_v45, %v163_v47 }
  0x67   :  { %v198_v50 = vclamps-f32 %v164_v49, 1.0 }
  0x69   :  { %v167_v51 = vsub.f32 1.0, %v198_v50 }
  0x6b   :  { %v173_v52 = vsel %vm172_vm0, %v167_v51, 0.0 }
  0x6c   :  { %175 = vst [vmem:[#allocation7] sm:$0xff] %v173_v52 }
  0x6d   :  { %279 = shalt.err (!%p276_p6)
}
  0x6e   :  { %s280_s10 = scalar_lea.hbm %s384_s2, 128 }
  0x6f   :  { %p281_p7 = scmp.ne.s32.totalorder %s384_s2, %s280_s10  ;;  %p284_p8 = scmp.lt.u32.totalorder %s280_s10, %s384_s2 }
  0x71   :  { %p286_p9 = pnand %p284_p8, %p281_p7 }
  0x73   :  { %289 = shalt.err (!%p286_p9)
}
  0x74   :  { %185 = dma.vmem_to_hbm [thread:$0]  %s183_s6, 128, %s384_s2, [#allocation4]  }
  0x75   :  { %294 = dma.done.wait [#allocation4], 128  }
  0x76   :  { %295 = vsyncadd [#allocation4], 4294967168 }
  0x77   :  { %189 = vsyncpa [#allocation3], 1 }
  0x78   :  { %190 = vsyncpa [#allocation6], 1 }
  0x79   :  { %191 = vsyncpa [#allocation4], 1 }

</bundles_post_ra>
